<compile_context>
chip_gen: v5e
topology: v5e:2x2
jax: 0.10.0
libtpu: 0.0.40
codegen_flags: <defaults>
</compile_context>

<pallas_src>
import jax
import jax.numpy as jnp
import numpy as np
from jax.experimental import pallas as pl
from jax.experimental.pallas import tpu as pltpu


def _round_up(v, m):
    return (v + m - 1) // m * m


# ---------------------------------------------------------------------------
# One-time weight preparation (algebraic fusion + 128-lane segment padding).
#   Wm_eff  = Wm^T (+ I if residual)                      -> cls_x = x @ Wm_eff
#   W_score = Wm_eff @ Wc^T                               -> scores = x @ W_score
#   Wb^T, b_bbox                                          -> deltas
# W_all = [Wm_eff | W_score | Wb^T], every segment zero-padded to a 128-lane
# boundary so each output can be extracted at a vreg-aligned offset.
# ---------------------------------------------------------------------------
def prepare_fused_weights(w_bbox, b_bbox, w_map, w_cls, *, etf_residual=True,
                          include_cls_x=True, compute_dtype=jnp.bfloat16):
    d = w_map.shape[0]
    ob = w_bbox.shape[0]
    c = w_cls.shape[0]

    wm_eff = w_map.T.astype(jnp.float32)
    if etf_residual:
        wm_eff = wm_eff + jnp.eye(d, dtype=jnp.float32)        # residual folded
    w_score = wm_eff @ w_cls.T.astype(jnp.float32)              # (d, c) fused ETF
    wb_t = w_bbox.T.astype(jnp.float32)                         # (d, ob)

    d_pad = _round_up(d, 128) if include_cls_x else 0
    c_pad = _round_up(c, 128)
    ob_pad = _round_up(ob, 128)
    p_total = d_pad + c_pad + ob_pad

    segs = []
    if include_cls_x:
        segs.append(jnp.pad(wm_eff, ((0, 0), (0, d_pad - d))))
    segs.append(jnp.pad(w_score, ((0, 0), (0, c_pad - c))))
    segs.append(jnp.pad(wb_t, ((0, 0), (0, ob_pad - ob))))
    w_all = jnp.concatenate(segs, axis=1)                        # (d, p_total)

    b_all = jnp.zeros((1, p_total), jnp.float32)
    b_all = b_all.at[0, d_pad + c_pad:d_pad + c_pad + ob].set(
        b_bbox.astype(jnp.float32))

    dims = dict(d=d, c=c, ob=ob, d_pad=d_pad, c_pad=c_pad, ob_pad=ob_pad,
                p_total=p_total, include_cls_x=include_cls_x)
    # Note: if input_size were not 128-aligned at production scale, padding the
    # contraction dim (x cols + W_all rows) to 128/256 should be fused into the
    # producer of x rather than done here (extra HBM pass otherwise).
    return w_all.astype(compute_dtype), b_all, dims


# ---------------------------------------------------------------------------
# Kernel factory: K-tiled accumulation + lane-aligned output extraction.
# ---------------------------------------------------------------------------
def _make_head_kernel(dims):
    d, c, ob = dims["d"], dims["c"], dims["ob"]
    include_cls = dims["include_cls_x"]
    sco_start = dims["d_pad"]
    dlt_start = dims["d_pad"] + dims["c_pad"]

    def kernel(x_ref, w_ref, b_ref, *rest):
        out_refs, acc_ref = rest[:-1], rest[-1]
        k = pl.program_id(1)

        @pl.when(k == 0)
        def _init():
            acc_ref[...] = jnp.zeros_like(acc_ref)

        acc_ref[...] += jnp.dot(x_ref[...], w_ref[...],
                                preferred_element_type=jnp.float32)

        @pl.when(k == pl.num_programs(1) - 1)
        def _finalize():
            wide = acc_ref[...] + b_ref[...]           # bias added once
            idx = 0
            if include_cls:
                cls_ref = out_refs[idx]
                idx += 1
                cls_ref[...] = wide[:, :d].astype(cls_ref.dtype)
            sco_ref = out_refs[idx]
            dlt_ref = out_refs[idx + 1]
            sco_ref[...] = wide[:, sco_start:sco_start + c].astype(sco_ref.dtype)
            dlt_ref[...] = wide[:, dlt_start:dlt_start + ob].astype(dlt_ref.dtype)

    return kernel


# ---------------------------------------------------------------------------
# Forward wrapper.  Returns (scores, cls_x, deltas) [module order], or
# (scores, deltas) when the weights were prepared with include_cls_x=False.
# ---------------------------------------------------------------------------
def etf_head_forward(x, w_all, b_all, dims, *, block_n=1024, block_k=512,
                     out_dtype=None):
    if x.ndim > 2:
        x = x.reshape(x.shape[0], -1)
    n, d = x.shape
    assert d == dims["d"], (d, dims["d"])

    compute_dtype = w_all.dtype
    out_dtype = x.dtype if out_dtype is None else out_dtype
    x_c = x.astype(compute_dtype)

    # --- N (row) tiling: no host pad, ragged last block masked by Pallas ----
    sub = 16 if (jnp.dtype(compute_dtype).itemsize < 4
                 or jnp.dtype(out_dtype).itemsize < 4) else 8
    tn = min(block_n, _round_up(n, sub))
    if pl.cdiv(n, tn) == 1 and n > sub:
        tn = _round_up(pl.cdiv(n, 2), sub)     # >=2 grid steps (v7x dual-TC)
    n_steps = pl.cdiv(n, tn)

    # --- K (contraction) tiling: only exact 128-multiple tiles (no ragged K) --
    if d > block_k and d % 128 == 0:
        tk = max(128, min(block_k, d) - min(block_k, d) % 128)
        while d % tk:
            tk -= 128
    else:
        tk = d
    k_steps = pl.cdiv(d, tk)

    p_total = dims["p_total"]
    c, ob = dims["c"], dims["ob"]
    include_cls = dims["include_cls_x"]

    # --- outputs: separate, directly-sized arrays (no post-kernel slicing) --
    out_shapes, out_specs = [], []
    if include_cls:
        out_shapes.append(jax.ShapeDtypeStruct((n, d), out_dtype))
        out_specs.append(pl.BlockSpec((tn, d), lambda i, k: (i, 0)))
    out_shapes.append(jax.ShapeDtypeStruct((n, c), out_dtype))
    out_specs.append(pl.BlockSpec((tn, c), lambda i, k: (i, 0)))
    out_shapes.append(jax.ShapeDtypeStruct((n, ob), out_dtype))
    out_specs.append(pl.BlockSpec((tn, ob), lambda i, k: (i, 0)))

    # --- VMEM budget + advisory cost estimate --------------------------------
    in_b = jnp.dtype(compute_dtype).itemsize
    out_b = jnp.dtype(out_dtype).itemsize
    out_cols = (d if include_cls else 0) + c + ob
    vmem_need = (2 * tn * tk * in_b
                 + (1 if k_steps == 1 else 2) * tk * p_total * in_b
                 + 2 * p_total * 4
                 + tn * p_total * 4
                 + 2 * tn * out_cols * out_b)
    vmem_limit = int(min(64 * 2 ** 20, max(32 * 2 ** 20, int(1.35 * vmem_need))))

    cost = pl.CostEstimate(
        flops=2 * n * d * p_total,
        transcendentals=0,
        bytes_accessed=int(n * d * in_b + d * p_total * in_b + p_total * 4
                           + n * out_cols * out_b))

    kernel = _make_head_kernel(dims)

    def _call(single_buffer):
        def inv_spec(shape, imap):
            if single_buffer:
                return pl.BlockSpec(shape, imap, pipeline_mode=pl.Buffered(1))
            return pl.BlockSpec(shape, imap)

        # Weights are grid-invariant only when K is not tiled.
        w_spec = (inv_spec((tk, p_total), lambda i, k: (k, 0)) if k_steps == 1
                  else pl.BlockSpec((tk, p_total), lambda i, k: (k, 0)))
        in_specs = [pl.BlockSpec((tn, tk), lambda i, k: (i, k)),
                    w_spec,
                    inv_spec((1, p_total), lambda i, k: (0, 0))]

        return pl.pallas_call(
            kernel,
            out_shape=tuple(out_shapes),
            grid=(n_steps, k_steps),
            in_specs=in_specs,
            out_specs=tuple(out_specs),
            scratch_shapes=[pltpu.VMEM((tn, p_total), jnp.float32)],
            compiler_params=pltpu.CompilerParams(
                dimension_semantics=("parallel", "arbitrary"),
                vmem_limit_bytes=vmem_limit),
            cost_estimate=cost,
        )(x_c, w_all, b_all)

    try:
        outs = _call(True)
    except Exception:
        # pipeline_mode=pl.Buffered(1) not supported on this jax version:
        # fall back to default double-buffering (correctness unaffected).
        outs = _call(False)

    if include_cls:
        cls_x, scores, deltas = outs
        return scores, cls_x, deltas
    scores, deltas = outs
    return scores, deltas


# ---------------------------------------------------------------------------
# Deterministic parameter construction (mirrors nn.Module __init__).
# ---------------------------------------------------------------------------
def build_params(key, input_size, num_classes, cls_agnostic_bbox_reg=False,
                 box_dim=4):
    num_bbox_reg_classes = 1 if cls_agnostic_bbox_reg else num_classes
    k1, k2 = jax.random.split(key, 2)

    w_bbox = 0.001 * jax.random.normal(
        k1, (num_bbox_reg_classes * box_dim, input_size), dtype=jnp.float32)
    b_bbox = jnp.zeros((num_bbox_reg_classes * box_dim,), dtype=jnp.float32)

    w_map = 0.01 * jax.random.normal(
        k2, (input_size, input_size), dtype=jnp.float32)

    c = num_classes + 1
    eye_c = np.eye(c, dtype=np.float64)
    ones_c = np.ones((c, c), dtype=np.float64)
    weight = np.sqrt(c / (c - 1)) * (eye_c - ones_c / c)
    weight = weight / np.sqrt((1.0 / c) * (np.linalg.norm(weight, 'fro') ** 2))
    w_cls = weight @ np.eye(c, input_size)
    w_cls = jnp.asarray(w_cls, dtype=jnp.float32)

    return w_bbox, b_bbox, w_map, w_cls


# ---------------------------------------------------------------------------
# Plain-JAX reference (original two-step semantics).
# ---------------------------------------------------------------------------
def reference(x, w_bbox, b_bbox, w_map, w_cls, etf_residual=True):
    if x.ndim > 2:
        x = x.reshape(x.shape[0], -1)
    deltas = x @ w_bbox.T + b_bbox
    cls_x = x @ w_map.T
    if etf_residual:
        cls_x = cls_x + x
    scores = cls_x @ w_cls.T
    return scores, cls_x, deltas


if __name__ == "__main__":
    key = jax.random.PRNGKey(0)
    kx, kp = jax.random.split(key)

    # Small module-consistent shapes: 48 proposals (non-multiple of the row
    # tile -> exercises ragged last block), 32-d features, 7 fg classes.
    N, INPUT_SIZE, NUM_CLASSES = 48, 32, 7
    ETF_RESIDUAL = True

    x = jax.random.normal(kx, (N, INPUT_SIZE), dtype=jnp.float32)
    w_bbox, b_bbox, w_map, w_cls = build_params(kp, INPUT_SIZE, NUM_CLASSES)
    ref_s, ref_cx, ref_d = reference(x, w_bbox, b_bbox, w_map, w_cls,
                                     etf_residual=ETF_RESIDUAL)

    # --- default config: bf16 operands, f32 accumulation ---------------------
    w_all, b_all, dims = prepare_fused_weights(
        w_bbox, b_bbox, w_map, w_cls, etf_residual=ETF_RESIDUAL)
    s, cx, dl = etf_head_forward(x, w_all, b_all, dims)
    jax.block_until_ready((s, cx, dl))
    np.testing.assert_allclose(np.asarray(s), np.asarray(ref_s), rtol=5e-2, atol=5e-2)
    np.testing.assert_allclose(np.asarray(cx), np.asarray(ref_cx), rtol=5e-2, atol=5e-2)
    np.testing.assert_allclose(np.asarray(dl), np.asarray(ref_d), rtol=5e-2, atol=5e-2)

    # --- f32 config: tight check of the algebraic fusion ---------------------
    w32, b32, dims32 = prepare_fused_weights(
        w_bbox, b_bbox, w_map, w_cls, etf_residual=ETF_RESIDUAL,
        compute_dtype=jnp.float32)
    s32, cx32, dl32 = etf_head_forward(x, w32, b32, dims32)
    jax.block_until_ready((s32, cx32, dl32))
    np.testing.assert_allclose(np.asarray(s32), np.asarray(ref_s), rtol=5e-4, atol=5e-4)
    np.testing.assert_allclose(np.asarray(cx32), np.asarray(ref_cx), rtol=5e-4, atol=5e-4)
    np.testing.assert_allclose(np.asarray(dl32), np.asarray(ref_d), rtol=5e-4, atol=5e-4)

    # --- score-only inference path (cls_x block dropped) ---------------------
    w_so, b_so, dims_so = prepare_fused_weights(
        w_bbox, b_bbox, w_map, w_cls, etf_residual=ETF_RESIDUAL,
        include_cls_x=False)
    s_so, dl_so = etf_head_forward(x, w_so, b_so, dims_so)
    jax.block_until_ready((s_so, dl_so))
    np.testing.assert_allclose(np.asarray(s_so), np.asarray(ref_s), rtol=5e-2, atol=5e-2)
    np.testing.assert_allclose(np.asarray(dl_so), np.asarray(ref_d), rtol=5e-2, atol=5e-2)

    print("KERNEL_OK")
</pallas_src>

<mosaic_0001>
module attributes {stable_mosaic.version = 11 : i64} {
  func.func @kernel(%arg0: i32, %arg1: i32, %arg2: memref<32x32xbf16, #tpu.memory_space<vmem>>, %arg3: memref<32x384xbf16, #tpu.memory_space<vmem>>, %arg4: memref<1x384xf32, #tpu.memory_space<vmem>>, %arg5: memref<32x32xf32, #tpu.memory_space<vmem>>, %arg6: memref<32x8xf32, #tpu.memory_space<vmem>>, %arg7: memref<32x28xf32, #tpu.memory_space<vmem>>, %arg8: memref<32x384xf32, #tpu.memory_space<vmem>>) attributes {dimension_semantics = [#tpu.dimension_semantics<parallel>, #tpu.dimension_semantics<arbitrary>], iteration_bounds = array<i64: 2, 1>, scalar_prefetch = 0 : i64, scratch_operands = 1 : i64, tpu.core_type = #tpu.core_type<tc>, window_params = [{transform_indices = @transform_0, window_bounds = array<i64: 32, 32>}, {pipeline_mode = #tpu.pipeline_mode<synchronous>, transform_indices = @transform_1, window_bounds = array<i64: 32, 384>}, {pipeline_mode = #tpu.pipeline_mode<synchronous>, transform_indices = @transform_2, window_bounds = array<i64: 1, 384>}, {transform_indices = @transform_3, window_bounds = array<i64: 32, 32>}, {transform_indices = @transform_4, window_bounds = array<i64: 32, 8>}, {transform_indices = @transform_5, window_bounds = array<i64: 32, 28>}]} {
    %c0_i32 = arith.constant 0 : i32
    %0 = arith.cmpi eq, %arg1, %c0_i32 : i32
    %1 = arith.extui %0 : i1 to i32
    %c0_i32_0 = arith.constant 0 : i32
    %2 = arith.cmpi ne, %1, %c0_i32_0 : i32
    scf.if %2 {
      %cst_10 = arith.constant 0.000000e+00 : f32
      %12 = vector.broadcast %cst_10 : f32 to vector<32x384xf32>
      %c0_11 = arith.constant 0 : index
      %c0_12 = arith.constant 0 : index
      %13 = vector.load %arg8[%c0_11, %c0_12] : memref<32x384xf32, #tpu.memory_space<vmem>>, vector<32x384xf32>
      tpu.vector_store %arg8[%c0_11, %c0_12], %12 {strides = array<i32>} : memref<32x384xf32, #tpu.memory_space<vmem>>, vector<32x384xf32>,
    } else {
    }
    %c0 = arith.constant 0 : index
    %c0_1 = arith.constant 0 : index
    %3 = vector.load %arg8[%c0, %c0_1] : memref<32x384xf32, #tpu.memory_space<vmem>>, vector<32x384xf32>
    %c0_2 = arith.constant 0 : index
    %c0_3 = arith.constant 0 : index
    %4 = vector.load %arg2[%c0_2, %c0_3] : memref<32x32xbf16, #tpu.memory_space<vmem>>, vector<32x32xbf16>
    %c0_4 = arith.constant 0 : index
    %c0_5 = arith.constant 0 : index
    %5 = vector.load %arg3[%c0_4, %c0_5] : memref<32x384xbf16, #tpu.memory_space<vmem>>, vector<32x384xbf16>
    %cst = arith.constant dense<0.000000e+00> : vector<32x384xf32>
    %6 = tpu.matmul %4, %5, %cst {dimension_numbers = #tpu.dot_dimension_numbers<[1], [0], [0], [1], [0, 0, 1, 1], [], []>} : vector<32x32xbf16>, vector<32x384xbf16>, vector<32x384xf32> -> vector<32x384xf32>
    %7 = arith.addf %3, %6 : vector<32x384xf32>
    %c0_6 = arith.constant 0 : index
    %c0_7 = arith.constant 0 : index
    %8 = vector.load %arg8[%c0_6, %c0_7] : memref<32x384xf32, #tpu.memory_space<vmem>>, vector<32x384xf32>
    tpu.vector_store %arg8[%c0_6, %c0_7], %7 {strides = array<i32>} : memref<32x384xf32, #tpu.memory_space<vmem>>, vector<32x384xf32>,
    %c0_i32_8 = arith.constant 0 : i32
    %9 = arith.cmpi eq, %arg1, %c0_i32_8 : i32
    %10 = arith.extui %9 : i1 to i32
    %c0_i32_9 = arith.constant 0 : i32
    %11 = arith.cmpi ne, %10, %c0_i32_9 : i32
    scf.if %11 {
      %c0_10 = arith.constant 0 : index
      %c0_11 = arith.constant 0 : index
      %12 = vector.load %arg8[%c0_10, %c0_11] : memref<32x384xf32, #tpu.memory_space<vmem>>, vector<32x384xf32>
      %c0_12 = arith.constant 0 : index
      %c0_13 = arith.constant 0 : index
      %13 = vector.load %arg4[%c0_12, %c0_13] : memref<1x384xf32, #tpu.memory_space<vmem>>, vector<1x384xf32>
      %14 = vector.broadcast %13 : vector<1x384xf32> to vector<32x384xf32>
      %15 = arith.addf %12, %14 : vector<32x384xf32>
      %16 = vector.extract_strided_slice %15 {offsets = [0, 0], sizes = [32, 32], strides = [1, 1]} : vector<32x384xf32> to vector<32x32xf32>
      %c0_14 = arith.constant 0 : index
      %c0_15 = arith.constant 0 : index
      %17 = vector.load %arg5[%c0_14, %c0_15] : memref<32x32xf32, #tpu.memory_space<vmem>>, vector<32x32xf32>
      tpu.vector_store %arg5[%c0_14, %c0_15], %16 {strides = array<i32>} : memref<32x32xf32, #tpu.memory_space<vmem>>, vector<32x32xf32>,
      %18 = vector.extract_strided_slice %15 {offsets = [0, 128], sizes = [32, 8], strides = [1, 1]} : vector<32x384xf32> to vector<32x8xf32>
      %c0_16 = arith.constant 0 : index
      %c0_17 = arith.constant 0 : index
      %19 = vector.load %arg6[%c0_16, %c0_17] : memref<32x8xf32, #tpu.memory_space<vmem>>, vector<32x8xf32>
      tpu.vector_store %arg6[%c0_16, %c0_17], %18 {strides = array<i32>} : memref<32x8xf32, #tpu.memory_space<vmem>>, vector<32x8xf32>,
      %20 = vector.extract_strided_slice %15 {offsets = [0, 256], sizes = [32, 28], strides = [1, 1]} : vector<32x384xf32> to vector<32x28xf32>
      %c0_18 = arith.constant 0 : index
      %c0_19 = arith.constant 0 : index
      %21 = vector.load %arg7[%c0_18, %c0_19] : memref<32x28xf32, #tpu.memory_space<vmem>>, vector<32x28xf32>
      tpu.vector_store %arg7[%c0_18, %c0_19], %20 {strides = array<i32>} : memref<32x28xf32, #tpu.memory_space<vmem>>, vector<32x28xf32>,
    } else {
    }
    return
  }
  func.func @transform_0(%arg0: i32, %arg1: i32) -> (i32, i32) {
    %c0_i32 = arith.constant 0 : i32
    return %arg0, %arg1 : i32, i32
  }
  func.func @transform_1(%arg0: i32, %arg1: i32) -> (i32, i32) {
    %c0_i32 = arith.constant 0 : i32
    %c0_i32_0 = arith.constant 0 : i32
    return %arg1, %c0_i32 : i32, i32
  }
  func.func @transform_2(%arg0: i32, %arg1: i32) -> (i32, i32) {
    %c0_i32 = arith.constant 0 : i32
    %c0_i32_0 = arith.constant 0 : i32
    %c0_i32_1 = arith.constant 0 : i32
    return %c0_i32, %c0_i32_0 : i32, i32
  }
  func.func @transform_3(%arg0: i32, %arg1: i32) -> (i32, i32) {
    %c0_i32 = arith.constant 0 : i32
    %c0_i32_0 = arith.constant 0 : i32
    return %arg0, %c0_i32 : i32, i32
  }
  func.func @transform_4(%arg0: i32, %arg1: i32) -> (i32, i32) {
    %c0_i32 = arith.constant 0 : i32
    %c0_i32_0 = arith.constant 0 : i32
    return %arg0, %c0_i32 : i32, i32
  }
  func.func @transform_5(%arg0: i32, %arg1: i32) -> (i32, i32) {
    %c0_i32 = arith.constant 0 : i32
    %c0_i32_0 = arith.constant 0 : i32
    return %arg0, %c0_i32 : i32, i32
  }
}

module attributes {stable_mosaic.version = 11 : i64} {
  func.func @kernel(%arg0: i32, %arg1: i32, %arg2: memref<32x32xbf16, #tpu.memory_space<vmem>>, %arg3: memref<32x384xbf16, #tpu.memory_space<vmem>>, %arg4: memref<1x384xf32, #tpu.memory_space<vmem>>, %arg5: memref<32x32xf32, #tpu.memory_space<vmem>>, %arg6: memref<32x8xf32, #tpu.memory_space<vmem>>, %arg7: memref<32x28xf32, #tpu.memory_space<vmem>>, %arg8: memref<32x384xf32, #tpu.memory_space<vmem>>) attributes {dimension_semantics = [#tpu.dimension_semantics<parallel>, #tpu.dimension_semantics<arbitrary>], iteration_bounds = array<i64: 2, 1>, scalar_prefetch = 0 : i64, scratch_operands = 1 : i64, tpu.core_type = #tpu.core_type<tc>, window_params = [{transform_indices = @transform_0, window_bounds = array<i64: 32, 32>}, {transform_indices = @transform_1, window_bounds = array<i64: 32, 384>}, {pipeline_mode = #tpu.pipeline_mode<synchronous>, transform_indices = @transform_2, window_bounds = array<i64: 1, 384>}, {transform_indices = @transform_3, window_bounds = array<i64: 32, 32>}, {transform_indices = @transform_4, window_bounds = array<i64: 32, 8>}, {transform_indices = @transform_5, window_bounds = array<i64: 32, 28>}]} {
    %c0_i32 = arith.constant 0 : i32
    %0 = arith.cmpi eq, %arg1, %c0_i32 : i32
    %1 = arith.extui %0 : i1 to i32
    %c0_i32_0 = arith.constant 0 : i32
    %2 = arith.cmpi ne, %1, %c0_i32_0 : i32
    scf.if %2 {
      %cst_10 = arith.constant 0.000000e+00 : f32
      %12 = vector.broadcast %cst_10 : f32 to vector<32x384xf32>
      %c0_11 = arith.constant 0 : index
      %c0_12 = arith.constant 0 : index
      %13 = vector.load %arg8[%c0_11, %c0_12] : memref<32x384xf32, #tpu.memory_space<vmem>>, vector<32x384xf32>
      tpu.vector_store %arg8[%c0_11, %c0_12], %12 {strides = array<i32>} : memref<32x384xf32, #tpu.memory_space<vmem>>, vector<32x384xf32>,
    } else {
    }
    %c0 = arith.constant 0 : index
    %c0_1 = arith.constant 0 : index
    %3 = vector.load %arg8[%c0, %c0_1] : memref<32x384xf32, #tpu.memory_space<vmem>>, vector<32x384xf32>
    %c0_2 = arith.constant 0 : index
    %c0_3 = arith.constant 0 : index
    %4 = vector.load %arg2[%c0_2, %c0_3] : memref<32x32xbf16, #tpu.memory_space<vmem>>, vector<32x32xbf16>
    %c0_4 = arith.constant 0 : index
    %c0_5 = arith.constant 0 : index
    %5 = vector.load %arg3[%c0_4, %c0_5] : memref<32x384xbf16, #tpu.memory_space<vmem>>, vector<32x384xbf16>
    %cst = arith.constant dense<0.000000e+00> : vector<32x384xf32>
    %6 = tpu.matmul %4, %5, %cst {dimension_numbers = #tpu.dot_dimension_numbers<[1], [0], [0], [1], [0, 0, 1, 1], [], []>} : vector<32x32xbf16>, vector<32x384xbf16>, vector<32x384xf32> -> vector<32x384xf32>
    %7 = arith.addf %3, %6 : vector<32x384xf32>
    %c0_6 = arith.constant 0 : index
    %c0_7 = arith.constant 0 : index
    %8 = vector.load %arg8[%c0_6, %c0_7] : memref<32x384xf32, #tpu.memory_space<vmem>>, vector<32x384xf32>
    tpu.vector_store %arg8[%c0_6, %c0_7], %7 {strides = array<i32>} : memref<32x384xf32, #tpu.memory_space<vmem>>, vector<32x384xf32>,
    %c0_i32_8 = arith.constant 0 : i32
    %9 = arith.cmpi eq, %arg1, %c0_i32_8 : i32
    %10 = arith.extui %9 : i1 to i32
    %c0_i32_9 = arith.constant 0 : i32
    %11 = arith.cmpi ne, %10, %c0_i32_9 : i32
    scf.if %11 {
      %c0_10 = arith.constant 0 : index
      %c0_11 = arith.constant 0 : index
      %12 = vector.load %arg8[%c0_10, %c0_11] : memref<32x384xf32, #tpu.memory_space<vmem>>, vector<32x384xf32>
      %c0_12 = arith.constant 0 : index
      %c0_13 = arith.constant 0 : index
      %13 = vector.load %arg4[%c0_12, %c0_13] : memref<1x384xf32, #tpu.memory_space<vmem>>, vector<1x384xf32>
      %14 = vector.broadcast %13 : vector<1x384xf32> to vector<32x384xf32>
      %15 = arith.addf %12, %14 : vector<32x384xf32>
      %16 = vector.extract_strided_slice %15 {offsets = [0, 0], sizes = [32, 32], strides = [1, 1]} : vector<32x384xf32> to vector<32x32xf32>
      %c0_14 = arith.constant 0 : index
      %c0_15 = arith.constant 0 : index
      %17 = vector.load %arg5[%c0_14, %c0_15] : memref<32x32xf32, #tpu.memory_space<vmem>>, vector<32x32xf32>
      tpu.vector_store %arg5[%c0_14, %c0_15], %16 {strides = array<i32>} : memref<32x32xf32, #tpu.memory_space<vmem>>, vector<32x32xf32>,
      %18 = vector.extract_strided_slice %15 {offsets = [0, 128], sizes = [32, 8], strides = [1, 1]} : vector<32x384xf32> to vector<32x8xf32>
      %c0_16 = arith.constant 0 : index
      %c0_17 = arith.constant 0 : index
      %19 = vector.load %arg6[%c0_16, %c0_17] : memref<32x8xf32, #tpu.memory_space<vmem>>, vector<32x8xf32>
      tpu.vector_store %arg6[%c0_16, %c0_17], %18 {strides = array<i32>} : memref<32x8xf32, #tpu.memory_space<vmem>>, vector<32x8xf32>,
      %20 = vector.extract_strided_slice %15 {offsets = [0, 256], sizes = [32, 28], strides = [1, 1]} : vector<32x384xf32> to vector<32x28xf32>
      %c0_18 = arith.constant 0 : index
      %c0_19 = arith.constant 0 : index
      %21 = vector.load %arg7[%c0_18, %c0_19] : memref<32x28xf32, #tpu.memory_space<vmem>>, vector<32x28xf32>
      tpu.vector_store %arg7[%c0_18, %c0_19], %20 {strides = array<i32>} : memref<32x28xf32, #tpu.memory_space<vmem>>, vector<32x28xf32>,
    } else {
    }
    return
  }
  func.func @transform_0(%arg0: i32, %arg1: i32) -> (i32, i32) {
    %c0_i32 = arith.constant 0 : i32
    return %arg0, %arg1 : i32, i32
  }
  func.func @transform_1(%arg0: i32, %arg1: i32) -> (i32, i32) {
    %c0_i32 = arith.constant 0 : i32
    %c0_i32_0 = arith.constant 0 : i32
    return %arg1, %c0_i32 : i32, i32
  }
  func.func @transform_2(%arg0: i32, %arg1: i32) -> (i32, i32) {
    %c0_i32 = arith.constant 0 : i32
    %c0_i32_0 = arith.constant 0 : i32
    %c0_i32_1 = arith.constant 0 : i32
    return %c0_i32, %c0_i32_0 : i32, i32
  }
  func.func @transform_3(%arg0: i32, %arg1: i32) -> (i32, i32) {
    %c0_i32 = arith.constant 0 : i32
    %c0_i32_0 = arith.constant 0 : i32
    return %arg0, %c0_i32 : i32, i32
  }
  func.func @transform_4(%arg0: i32, %arg1: i32) -> (i32, i32) {
    %c0_i32 = arith.constant 0 : i32
    %c0_i32_0 = arith.constant 0 : i32
    return %arg0, %c0_i32 : i32, i32
  }
  func.func @transform_5(%arg0: i32, %arg1: i32) -> (i32, i32) {
    %c0_i32 = arith.constant 0 : i32
    %c0_i32_0 = arith.constant 0 : i32
    return %arg0, %c0_i32 : i32, i32
  }
}

</mosaic_0001>

<bundles_post_ra>
// kernel: tpu_custom_call.1
= control target key start
LH: loop header
LB: loop body
LE: loop exit
PB: predicated region body
PF: predicated region fallthrough
CT: control target
= control target key end

     0   :  { %s2119_s0 = inlined_call_operand.vmem [shape: bf16[48,32], index: 0, kind: input, shape index: {}]   ;;  %s2120_s1 = inlined_call_operand.hbm [shape: bf16[32,384], index: 1, kind: input, shape index: {}]   ;;  %s2121_s2 = inlined_call_operand.vmem [shape: f32[1,384], index: 2, kind: input, shape index: {}]   ;;  %s2122_s3 = inlined_call_operand.vmem [shape: f32[48,32], index: 3, kind: output, shape index: {0}]   ;;  %s2123_s4 = inlined_call_operand.vmem [shape: f32[48,8], index: 4, kind: output, shape index: {1}]   ;;  %s2124_s5 = inlined_call_operand.vmem [shape: f32[48,28], index: 5, kind: output, shape index: {2}]  }
   0x1   :  { %2125 = sst [smem:[#allocation9_spill]] %s2119_s0 }
   0x2   :  { %11 = vsyncpa [#allocation4], 0  ;;  %s1862_s18 = smov 0   ;;  %s1864_s19 = smov 0  }
   0x3   :  { %s1866_s20 = smov 0   ;;  %s1868_s21 = smov 0  }
   0x4   :  { %s1870_s22 = smov 0  }
   0x5 LB: > { %s1202_s23 = sadd.s32 4294967295, %s1731_s22   ;;  %s29_s24 = sadd.s32 1, %s1727_s21  ;;  %s1731_s22 = sphi %s1870_s22, %s17_s22   ;;  %s1727_s21 = sphi %s1868_s21, %s2141_s21   ;;  %s1723_s20 = sphi %s1866_s20, %s2140_s20   ;;  %s1719_s19 = sphi %s1864_s19, %s2139_s19   ;;  %s1715_s18 = sphi %s1862_s18, %s2138_s18  }
   0x6   : > { %p31_p0 = scmp.ge.s32.totalorder %s29_s24, 2  ;;  %s111_s25 = sadd.s32 1, %s1719_s19 }
   0x7   : > { %p121_p1 = scmp.ne.s32.totalorder %s1719_s19, %s1715_s18  ;;  %p122_p2 = scmp.eq.s32.totalorder %s1202_s23, 1 }
   0x8   : > { %s2143_s24 = smov (%p31_p0, %s29_s24), 0  ;;  %p1204_p4 = scmp.ge.s32.totalorder %s1731_s22, 1 }
   0x9   : > { %p1894_p3 = por %p122_p2, %p121_p1  ;;  %s108_s27 = ssub.s32 %s1727_s21, %s2143_s24 }
   0xa   : > { %p187_p5 = scmp.lt.s32.totalorder %s1731_s22, 3  ;;  %p109_p6 = scmp.eq.s32.totalorder %s108_s27, 0 }
   0xb   : > { %p1902_p8 = scmp.eq.s32.totalorder %s1202_s23, 0  ;;  %s202_s7 = sshll.u32 %s2120_s1, 4  ;;  %s203_s7 = int_to_ptr.hbm [resolvable:$true] %s202_s7 }
   0xc   : > { %p188_p7 = pnand %p1204_p4, %p187_p5  ;;  %s1829_s8 = smov [#allocation3]  }
   0xd   : > { %s1907_s29 = scalar_select %p109_p6, %s1719_s19, %s111_s25  }
   0xe   : > { %p1322_p9 = pneg %p188_p7  ;;  %s204_s9 = sshll.u32 %s1829_s8, 4  ;;  %s205_s9 = int_to_ptr.vmem [resolvable:$true] %s204_s9 }
   0xf   : > { %s1830_s10 = smov 192   ;;  %s1831_s11 = smov 12  }
  0x10   : > { %p1323_p10 = pnand %p1902_p8, %p1322_p9  ;;  %243 = sbr.rel (%p188_p7) target bundleno = 320 (0x140), region = 32 }
  0x12   : > { %1325 = dma.hbm_to_vmem [thread:$0]  (!%p1323_p10), %s203_s7, 768, %s205_s9, [#allocation4], %s1830_s10, %s1830_s10, %s1831_s11  }
  0x15   : > { %1710 = dma.done.wait (%p1902_p8), [#allocation4], 768  }
  0x16   : > { %1712 = vsyncadd (%p1902_p8), [#allocation4], 4294966528  ;;  %s1919_s12 = sshll.u32 %s1723_s20, 2  ;;  %v1304_v0 = vld [vmem:[#allocation3 + $0x1c] sm:$0xf]  ;;  %s2128_s0 = sld [smem:[#allocation9_spill]] }
  0x17   : > { %p291_p11 = scmp.lt.s32.totalorder %s1919_s12, 5  ;;  %v1238_v1 = vld [vmem:[#allocation3 + $0x24] sm:$0xf0]  ;;  %v1244_v2 = vld [vmem:[#allocation3 + $0x20] sm:$0xf]  ;;  %vm402_vm0 = vcmask 261120  }
  0x18   : > { %v1241_v3 = vor.u32 %v1304_v0, %v1238_v1  ;;  %v1306_v4 = vld [vmem:[#allocation3 + $0x28] sm:$0xf0]  ;;  %v1301_v5 = vld [vmem:[#allocation3 + $0x4] sm:$0xf]  ;;  %v1226_v6 = vld [vmem:[#allocation3 + $0xc] sm:$0xf0] }
  0x19   : > { %s292_s13 = scalar_select %p291_p11, %s1919_s12, 5  ;;  %v1245_v7 = vor.u32 %v1306_v4, %v1244_v2  ;;  %v1232_v8 = vld [vmem:[#allocation3 + $0x8] sm:$0xf]  ;;  %v1303_v9 = vld [vmem:[#allocation3 + $0x10] sm:$0xf0]  ;;  %v1229_v10 = vor.u32 %v1301_v5, %v1226_v6  ;;  %vm529_vm1 = vcmask 64512  }
  0x1a   : > { %434 = vmatpush.bf16.msra.mxu1 %v1241_v3  ;;  %v1236_v11 = vld [vmem:[#allocation3 + $0x18] sm:$0xf]  ;;  %v1305_v12 = vld [vmem:[#allocation3 + $0x20] sm:$0xf0]  ;;  %v1224_v13 = vld [vmem:[#allocation3] sm:$0xf]  ;;  %v1233_v14 = vor.u32 %v1303_v9, %v1232_v8 }
  0x1b   : > { %s1213_s14 = sshll.u32 %s292_s13, 2  ;;  %453 = vmatpush.bf16.msra.mxu2 %v1245_v7  ;;  %v1237_v15 = vor.u32 %v1305_v12, %v1236_v11  ;;  %v1302_v16 = vld [vmem:[#allocation3 + $0x8] sm:$0xf0]  ;;  %s271_s23 = sand.u32 1, %s1715_s18   ;;  %v505_v20 = vld [vmem:[%s2121_s2] sm:$0x7] }
  0x1c   : > { %s297_s17 = scalar_lea.vmem %s2128_s0, %s1213_s14  ;;  %v1225_v18 = vor.u32 %v1302_v16, %v1224_v13  ;;  %s1209_s28 = sshll.u32 %s271_s23, 5  ;;  %v508_v21 = vperm.slane %v505_v20, 1  ;;  %v507_v24 = vperm.slane %v505_v20, 0  ;;  %v509_v25 = vperm.slane %v505_v20, 2 }
  0x1d   : > { %v1299_v17 = vld [vmem:[%s297_s17] sm:$0xff]  ;;  %1316 = vmatpush.bf16.msra.mxu3 %v1237_v15  ;;  %415 = vmatpush.bf16.msra.mxu0 %v1237_v15  ;;  %v1300_v19 = vld [vmem:[%s297_s17 + $0x8] sm:$0xff]  ;;  %s1936_s30 = scalar_lea.vmem [#allocation6], %s1209_s28   ;;  %vm534_vm2 = vcmask 228352   ;;  %s1940_s18 = scalar_lea.vmem [#allocation5], %s1209_s28  }
  0x1e   : > { %435 = vmatpush.bf16.msra.mxu1 %v1229_v10  ;;  %s1944_s6 = scalar_lea.vmem [#allocation7], %s1209_s28   ;;  %s555_s7 = ssub.s32 (%p1894_p3), 6, %s1919_s12 }
  0x1f   : > { %454 = vmatpush.bf16.msra.mxu2 %v1233_v14  ;;  %s1307_s8 = sshll.u32 (%p1894_p3), %s1723_s20, 5  ;;  %p556_p12 = scmp.lt.s32.totalorder (%p1894_p3), %s555_s7, 4 }
  0x20   : > { %s1973_s11 = scalar_lea.vmem (%p1894_p3), %s2122_s3, %s1307_s8  }
  0x21   : > { %1248 = vmatmul.msk.bf16.vlgmr.msra.gmra.mxu1 %vm402_vm0, %v1299_v17  ;;  %1317 = vmatpush.bf16.msra.mxu3 %v1225_v18 }
  0x22   : > { %1250 = vmatmul.msk.bf16.vlgmr.msra.gmra.mxu2 %vm402_vm0, %v1299_v17  ;;  %416 = vmatpush.bf16.msra.mxu0 %v1225_v18 }
  0x24   : > { %1247 = vmatmul.msk.bf16.vlgmr.msra.gmra.mxu3 %vm402_vm0, %v1300_v19 }
  0x25   : > { %1246 = vmatmul.msk.bf16.vlgmr.msra.gmra.mxu0 %vm402_vm0, %v1299_v17 }
  0x31   : > { %1249 = vmatmul.msk.bf16.gmra.mxu1 %vm402_vm0, %v1300_v19 }
  0x32   : > { %1251 = vmatmul.msk.bf16.gmra.mxu2 %vm402_vm0, %v1300_v19 }
  0x9e   : > { %v437_v22 = vpop.f32.mrf.mxu1 }
  0x9f   : > { %v514_v23 = vadd.f32 %v508_v21, %v437_v22 }
  0xa1   : > { %530 = vst.msk [vmem:[%s1936_s30] sm:$0xff] %vm529_vm1, %v514_v23 }
  0xa2   : > { %v418_v26 = vpop.f32.mrf.mxu0 }
  0xa3   : > { %v513_v27 = vadd.f32 %v507_v24, %v418_v26 }
  0xa5   : > { %v456_v28 = vpop.f32.mrf.mxu2  ;;  %525 = vst.msk [vmem:[%s1940_s18] sm:$0xff] %vm402_vm0, %v513_v27 }
  0xa6   : > { %v515_v29 = vadd.f32 %v509_v25, %v456_v28  ;;  %v439_v30 = vpop.f32.mrf.mxu1 }
  0xa7   : > { %v517_v31 = vadd.f32 %v508_v21, %v439_v30  ;;  %v423_v32 = vpop.f32.mrf.mxu3 }
  0xa8   : > { %535 = vst.msk [vmem:[%s1944_s6] sm:$0xff] %vm534_vm2, %v515_v29  ;;  %v519_v33 = vadd.f32 %v507_v24, %v423_v32 }
  0xa9   : > { %531 = vst.msk [vmem:[%s1936_s30 + $0x8] sm:$0xff] %vm529_vm1, %v517_v31 }
  0xaa   : > { %527 = vst.msk [vmem:[%s1940_s18 + $0x10] sm:$0xff] %vm402_vm0, %v519_v33  ;;  %v420_v34 = vpop.f32.mrf.mxu0 }
  0xab   : > { %v516_v35 = vadd.f32 %v507_v24, %v420_v34 }
  0xad   : > { %v458_v36 = vpop.f32.mrf.mxu2  ;;  %526 = vst.msk [vmem:[%s1940_s18 + $0x8] sm:$0xff] %vm402_vm0, %v516_v35 }
  0xae   : > { %v518_v37 = vadd.f32 %v509_v25, %v458_v36  ;;  %v442_v38 = vpop.f32.mrf.mxu1 }
  0xaf   : > { %v520_v39 = vadd.f32 %v508_v21, %v442_v38  ;;  %v425_v40 = vpop.f32.mrf.mxu3 }
  0xb0   : > { %536 = vst.msk [vmem:[%s1944_s6 + $0x8] sm:$0xff] %vm534_vm2, %v518_v37  ;;  %v522_v41 = vadd.f32 %v507_v24, %v425_v40 }
  0xb1   : > { %532 = vst.msk [vmem:[%s1936_s30 + $0x10] sm:$0xff] %vm529_vm1, %v520_v39 }
  0xb2   : > { %528 = vst.msk [vmem:[%s1940_s18 + $0x18] sm:$0xff] %vm402_vm0, %v522_v41 }
  0xb5   : > { %v461_v42 = vpop.f32.mrf.mxu2 }
  0xb6   : > { %v521_v43 = vadd.f32 %v509_v25, %v461_v42  ;;  %v444_v44 = vpop.f32.mrf.mxu1 }
  0xb7   : > { %v523_v45 = vadd.f32 %v508_v21, %v444_v44 }
  0xb8   : > { %537 = vst.msk [vmem:[%s1944_s6 + $0x10] sm:$0xff] %vm534_vm2, %v521_v43 }
  0xb9   : > { %533 = vst.msk [vmem:[%s1936_s30 + $0x18] sm:$0xff] %vm529_vm1, %v523_v45 }
  0xbc   : > { %553 = sbr.rel (!%p1894_p3) target bundleno = 232 (0xe8), region = 48 }
  0xbd   : > { %v463_v46 = vpop.f32.mrf.mxu2 }
  0xbe   : > { %v524_v47 = vadd.f32 %v509_v25, %v463_v46 }
  0xc0   : > { %538 = vst.msk [vmem:[%s1944_s6 + $0x18] sm:$0xff] %vm534_vm2, %v524_v47 }
  0xc1   : > { %s2145_s7 = smov (!%p556_p12, %s555_s7), 4 }
  0xc2   : > { %s1256_s13 = sshll.u32 %s2145_s7, 3 }
  0xc3   : > { %p1259_p13 = scmp.eq.s32.totalorder %s1256_s13, 0 }
  0xc4   : > { %s1979_s14 = sshrl.u32 (!%p1259_p13), %s2145_s7, 2 }
  0xc5   : > { %564 = sbr.rel (%p1259_p13) target bundleno = 232 (0xe8), region = 52  ;;  %p1260_p0 = scmp.le.s32.totalorder (!%p1259_p13), %s1979_s14, 0 }
  0xca   : > { %1067 = sbr.rel (%p1260_p0) target bundleno = 215 (0xd7), region = 274  ;;  %s2129_s15 = smov (!%p1260_p0), %s1973_s11 }
  0xcb   : > { %s2130_s16 = smov (!%p1260_p0), %s1940_s18  ;;  %s1988_s17 = smov (!%p1260_p0), 0  }
  0xcc   : > { %s1745_s23 = smov (!%p1260_p0), 0  }
  0xcf LB: >> { %v633_v48 = vld [vmem:[%s1739_s16] sm:$0xff]  ;;  %v635_v49 = vld [vmem:[%s1739_s16 + $0x8] sm:$0xff]  ;;  %v637_v50 = vld [vmem:[%s1739_s16 + $0x10] sm:$0xff]  ;;  %s641_s25 = sadd.s32 1, %s1743_s17  ;;  %s627_s23 = sadd.s32 1, %s1747_s23   ;;  %s1747_s23 = sphi %s1745_s23, %s627_s23   ;;  %s1743_s17 = sphi %s1988_s17, %s2131_s17   ;;  %s1739_s16 = sphi %s2130_s16, %s646_s16   ;;  %s1735_s15 = sphi %s2129_s15, %s647_s15  }
  0xd0   : >> { %634 = vst [vmem:[%s1735_s15] sm:$0xff] %v633_v48  ;;  %v639_v51 = vld [vmem:[%s1739_s16 + $0x18] sm:$0xff]  ;;  %p642_p1 = scmp.ge.s32.totalorder %s641_s25, %s1979_s14  ;;  %p626_p2 = scmp.ge.s32.totalorder %s627_s23, %s1979_s14 }
  0xd1   : >> { %636 = vst [vmem:[%s1735_s15 + $0x8] sm:$0xff] %v635_v49 }
  0xd2   : >> { %638 = vst [vmem:[%s1735_s15 + $0x10] sm:$0xff] %v637_v50  ;;  %s2147_s25 = smov (%p642_p1, %s641_s25), 0  ;;  %629 = sbr.rel (!%p626_p2) target bundleno = 207 (0xcf), region = 280 }
  0xd3   : >> { %640 = vst [vmem:[%s1735_s15 + $0x18] sm:$0xff] %v639_v51  ;;  %s1261_s27 = sshll.u32 %s2147_s25, 5  ;;  %s2131_s17 = smov %s2147_s25 }
  0xd4   : >> { %s646_s16 = scalar_lea.vmem %s1940_s18, %s1261_s27 [#allocation5]   ;;  %s647_s15 = scalar_lea.vmem %s1973_s11, %s1261_s27  }
  0xd7 PF: > { %s2004_s28 = sand.u32 3, %s2145_s7   ;;  %s1308_s8 = sshll.u32 %s1979_s14, 5 }
  0xd8   : > { %s652_s9 = scalar_lea.vmem %s1940_s18, %s1308_s8 [#allocation5]   ;;  %s654_s10 = scalar_lea.vmem %s1973_s11, %s1308_s8  }
  0xd9   : > { %p1266_p4 = scmp.le.s32.totalorder %s2004_s28, 0 }
  0xda   : > { %s1749_s13 = smov (!%p1266_p4), %s654_s10   ;;  %s1753_s17 = smov (!%p1266_p4), %s652_s9  }
  0xdb   : > { %1081 = sbr.rel (%p1266_p4) target bundleno = 232 (0xe8), region = 285  ;;  %s1757_s27 = smov (!%p1266_p4), 0  }
  0xdc   : > { %s1761_s0 = smov (!%p1266_p4), 0  }
  0xe0 LB: >> { %v664_v52 = vld [vmem:[%s1755_s17] sm:$0xff]  ;;  %s666_s7 = sadd.s32 1, %s1759_s27  ;;  %s658_s0 = sadd.s32 1, %s1763_s0   ;;  %s1763_s0 = sphi %s1761_s0, %s658_s0   ;;  %s1759_s27 = sphi %s1757_s27, %s1758_s27   ;;  %s1755_s17 = sphi %s1753_s17, %s671_s17   ;;  %s1751_s13 = sphi %s1749_s13, %s672_s13  }
  0xe1   : >> { %665 = vst [vmem:[%s1751_s13] sm:$0xff] %v664_v52  ;;  %p667_p5 = scmp.ge.s32.totalorder %s666_s7, %s2004_s28  ;;  %p657_p6 = scmp.ge.s32.totalorder %s658_s0, %s2004_s28 }
  0xe3   : >> { %s2149_s7 = smov (%p667_p5, %s666_s7), 0  ;;  %660 = sbr.rel (!%p657_p6) target bundleno = 224 (0xe0), region = 291 }
  0xe4   : >> { %s1267_s18 = sshll.u32 %s2149_s7, 3  ;;  %s1758_s27 = smov %s2149_s7  }
  0xe5   : >> { %s671_s17 = scalar_lea.vmem %s652_s9, %s1267_s18 [#allocation5]   ;;  %s672_s13 = scalar_lea.vmem %s654_s10, %s1267_s18  }
  0xe8 PF: > { %678 = sbr.rel (!%p1894_p3) target bundleno = 276 (0x114), region = 100  ;;  %s680_s11 = ssub.s32 (%p1894_p3), 6, %s1919_s12 }
  0xe9   : > { %s1310_s14 = sshll.u32 (%p1894_p3), %s1723_s20, 5  ;;  %p681_p7 = scmp.lt.s32.totalorder (%p1894_p3), %s680_s11, 4 }
  0xea   : > { %s2019_s23 = scalar_lea.vmem (%p1894_p3), %s2123_s4, %s1310_s14  }
  0xed   : > { %s2151_s11 = smov (!%p681_p7, %s680_s11), 4 }
  0xee   : > { %s1270_s0 = sshll.u32 %s2151_s11, 3 }
  0xef   : > { %p1273_p8 = scmp.eq.s32.totalorder %s1270_s0, 0 }
  0xf0   : > { %s2025_s25 = sshrl.u32 (!%p1273_p8), %s2151_s11, 2 }
  0xf1   : > { %689 = sbr.rel (%p1273_p8) target bundleno = 276 (0x114), region = 104  ;;  %p1274_p9 = scmp.le.s32.totalorder (!%p1273_p8), %s2025_s25, 0 }
  0xf6   : > { %1095 = sbr.rel (%p1274_p9) target bundleno = 259 (0x103), region = 296  ;;  %s2132_s28 = smov (!%p1274_p9), %s2019_s23 }
  0xf7   : > { %s2133_s8 = smov (!%p1274_p9), %s1936_s30  ;;  %s2034_s9 = smov (!%p1274_p9), 0  }
  0xf8   : > { %s1777_s10 = smov (!%p1274_p9), 0  }
  0xfb LB: >> { %v758_v53 = vld [vmem:[%s1771_s8] sm:$0xff]  ;;  %v760_v54 = vld [vmem:[%s1771_s8 + $0x8] sm:$0xff]  ;;  %v762_v55 = vld [vmem:[%s1771_s8 + $0x10] sm:$0xff]  ;;  %s766_s13 = sadd.s32 1, %s1775_s9  ;;  %s752_s10 = sadd.s32 1, %s1779_s10   ;;  %s1779_s10 = sphi %s1777_s10, %s752_s10   ;;  %s1775_s9 = sphi %s2034_s9, %s2134_s9   ;;  %s1771_s8 = sphi %s2133_s8, %s771_s8   ;;  %s1767_s28 = sphi %s2132_s28, %s772_s28  }
  0xfc   : >> { %759 = vst [vmem:[%s1767_s28] sm:$0xff] %v758_v53  ;;  %v764_v56 = vld [vmem:[%s1771_s8 + $0x18] sm:$0xff]  ;;  %p767_p10 = scmp.ge.s32.totalorder %s766_s13, %s2025_s25  ;;  %p751_p11 = scmp.ge.s32.totalorder %s752_s10, %s2025_s25 }
  0xfd   : >> { %761 = vst [vmem:[%s1767_s28 + $0x8] sm:$0xff] %v760_v54 }
  0xfe   : >> { %763 = vst [vmem:[%s1767_s28 + $0x10] sm:$0xff] %v762_v55  ;;  %s2153_s13 = smov (%p767_p10, %s766_s13), 0  ;;  %754 = sbr.rel (!%p751_p11) target bundleno = 251 (0xfb), region = 302 }
  0xff   : >> { %765 = vst [vmem:[%s1767_s28 + $0x18] sm:$0xff] %v764_v56  ;;  %s1275_s17 = sshll.u32 %s2153_s13, 5  ;;  %s2134_s9 = smov %s2153_s13 }
 0x100   : >> { %s771_s8 = scalar_lea.vmem %s1936_s30, %s1275_s17 [#allocation6]   ;;  %s772_s28 = scalar_lea.vmem %s2019_s23, %s1275_s17  }
 0x103 PF: > { %s2050_s27 = sand.u32 3, %s2151_s11   ;;  %s1311_s7 = sshll.u32 %s2025_s25, 5 }
 0x104   : > { %s777_s18 = scalar_lea.vmem %s1936_s30, %s1311_s7 [#allocation6]   ;;  %s779_s14 = scalar_lea.vmem %s2019_s23, %s1311_s7  }
 0x105   : > { %p1280_p12 = scmp.le.s32.totalorder %s2050_s27, 0 }
 0x106   : > { %s1781_s15 = smov (!%p1280_p12), %s779_s14   ;;  %s1785_s16 = smov (!%p1280_p12), %s777_s18  }
 0x107   : > { %1109 = sbr.rel (%p1280_p12) target bundleno = 276 (0x114), region = 307  ;;  %s1789_s0 = smov (!%p1280_p12), 0  }
 0x108   : > { %s1793_s9 = smov (!%p1280_p12), 0  }
 0x10c LB: >> { %v789_v57 = vld [vmem:[%s1787_s16] sm:$0xff]  ;;  %s791_s11 = sadd.s32 1, %s1791_s0  ;;  %s783_s9 = sadd.s32 1, %s1795_s9   ;;  %s1795_s9 = sphi %s1793_s9, %s783_s9   ;;  %s1791_s0 = sphi %s1789_s0, %s1790_s0   ;;  %s1787_s16 = sphi %s1785_s16, %s796_s16   ;;  %s1783_s15 = sphi %s1781_s15, %s797_s15  }
 0x10d   : >> { %790 = vst [vmem:[%s1783_s15] sm:$0xff] %v789_v57  ;;  %p792_p13 = scmp.ge.s32.totalorder %s791_s11, %s2050_s27  ;;  %p782_p0 = scmp.ge.s32.totalorder %s783_s9, %s2050_s27 }
 0x10f   : >> { %s2155_s11 = smov (%p792_p13, %s791_s11), 0  ;;  %785 = sbr.rel (!%p782_p0) target bundleno = 268 (0x10c), region = 313 }
 0x110   : >> { %s1281_s30 = sshll.u32 %s2155_s11, 3  ;;  %s1790_s0 = smov %s2155_s11  }
 0x111   : >> { %s796_s16 = scalar_lea.vmem %s777_s18, %s1281_s30 [#allocation6]   ;;  %s797_s15 = scalar_lea.vmem %s779_s14, %s1281_s30  }
 0x114 PF: > { %803 = sbr.rel (!%p1894_p3) target bundleno = 320 (0x140), region = 152  ;;  %s805_s23 = ssub.s32 (%p1894_p3), 6, %s1919_s12 }
 0x115   : > { %s1313_s25 = sshll.u32 (%p1894_p3), %s1723_s20, 5  ;;  %p806_p1 = scmp.lt.s32.totalorder (%p1894_p3), %s805_s23, 4 }
 0x116   : > { %s2065_s10 = scalar_lea.vmem (%p1894_p3), %s2124_s5, %s1313_s25  }
 0x119   : > { %s2157_s23 = smov (!%p806_p1, %s805_s23), 4 }
 0x11a   : > { %s1284_s13 = sshll.u32 %s2157_s23, 3 }
 0x11b   : > { %p1287_p2 = scmp.eq.s32.totalorder %s1284_s13, 0 }
 0x11c   : > { %s2071_s17 = sshrl.u32 (!%p1287_p2), %s2157_s23, 2 }
 0x11d   : > { %814 = sbr.rel (%p1287_p2) target bundleno = 320 (0x140), region = 156  ;;  %p1288_p3 = scmp.le.s32.totalorder (!%p1287_p2), %s2071_s17, 0 }
 0x122   : > { %1123 = sbr.rel (%p1288_p3) target bundleno = 303 (0x12f), region = 318  ;;  %s2135_s20 = smov (!%p1288_p3), %s2065_s10 }
 0x123   : > { %s2136_s26 = smov (!%p1288_p3), %s1944_s6  ;;  %s2080_s12 = smov (!%p1288_p3), 0  }
 0x124   : > { %s1809_s27 = smov (!%p1288_p3), 0  }
 0x127 LB: >> { %v883_v58 = vld [vmem:[%s1803_s26] sm:$0xff]  ;;  %v885_v59 = vld [vmem:[%s1803_s26 + $0x8] sm:$0xff]  ;;  %v887_v60 = vld [vmem:[%s1803_s26 + $0x10] sm:$0xff]  ;;  %s891_s7 = sadd.s32 1, %s1807_s12  ;;  %s877_s27 = sadd.s32 1, %s1811_s27   ;;  %s1811_s27 = sphi %s1809_s27, %s877_s27   ;;  %s1807_s12 = sphi %s2080_s12, %s2137_s12   ;;  %s1803_s26 = sphi %s2136_s26, %s896_s26   ;;  %s1799_s20 = sphi %s2135_s20, %s897_s20  }
 0x128   : >> { %884 = vst [vmem:[%s1799_s20] sm:$0xff] %v883_v58  ;;  %v889_v61 = vld [vmem:[%s1803_s26 + $0x18] sm:$0xff]  ;;  %p892_p4 = scmp.ge.s32.totalorder %s891_s7, %s2071_s17  ;;  %p876_p5 = scmp.ge.s32.totalorder %s877_s27, %s2071_s17 }
 0x129   : >> { %886 = vst [vmem:[%s1799_s20 + $0x8] sm:$0xff] %v885_v59 }
 0x12a   : >> { %888 = vst [vmem:[%s1799_s20 + $0x10] sm:$0xff] %v887_v60  ;;  %s2159_s7 = smov (%p892_p4, %s891_s7), 0  ;;  %879 = sbr.rel (!%p876_p5) target bundleno = 295 (0x127), region = 324 }
 0x12b   : >> { %890 = vst [vmem:[%s1799_s20 + $0x18] sm:$0xff] %v889_v61  ;;  %s1289_s18 = sshll.u32 %s2159_s7, 5  ;;  %s2137_s12 = smov %s2159_s7 }
 0x12c   : >> { %s896_s26 = scalar_lea.vmem %s1944_s6, %s1289_s18 [#allocation7]   ;;  %s897_s20 = scalar_lea.vmem %s2065_s10, %s1289_s18  }
 0x12f PF: > { %s2096_s14 = sand.u32 3, %s2157_s23   ;;  %s1314_s15 = sshll.u32 %s2071_s17, 5 }
 0x130   : > { %s902_s16 = scalar_lea.vmem %s1944_s6, %s1314_s15 [#allocation7]   ;;  %s904_s0 = scalar_lea.vmem %s2065_s10, %s1314_s15  }
 0x131   : > { %p1294_p6 = scmp.le.s32.totalorder %s2096_s14, 0 }
 0x132   : > { %s1813_s9 = smov (!%p1294_p6), %s904_s0   ;;  %s1817_s11 = smov (!%p1294_p6), %s902_s16  }
 0x133   : > { %1137 = sbr.rel (%p1294_p6) target bundleno = 320 (0x140), region = 329  ;;  %s1821_s30 = smov (!%p1294_p6), 0  }
 0x134   : > { %s1825_s25 = smov (!%p1294_p6), 0  }
 0x138 LB: >> { %v914_v62 = vld [vmem:[%s1819_s11] sm:$0xff]  ;;  %s916_s23 = sadd.s32 1, %s1823_s30  ;;  %s908_s25 = sadd.s32 1, %s1827_s25   ;;  %s1827_s25 = sphi %s1825_s25, %s908_s25   ;;  %s1823_s30 = sphi %s1821_s30, %s1822_s30   ;;  %s1819_s11 = sphi %s1817_s11, %s921_s11   ;;  %s1815_s9 = sphi %s1813_s9, %s922_s9  }
 0x139   : >> { %915 = vst [vmem:[%s1815_s9] sm:$0xff] %v914_v62  ;;  %p917_p7 = scmp.ge.s32.totalorder %s916_s23, %s2096_s14  ;;  %p907_p8 = scmp.ge.s32.totalorder %s908_s25, %s2096_s14 }
 0x13b   : >> { %s2161_s23 = smov (%p917_p7, %s916_s23), 0  ;;  %910 = sbr.rel (!%p907_p8) target bundleno = 312 (0x138), region = 335 }
 0x13c   : >> { %s1295_s6 = sshll.u32 %s2161_s23, 3  ;;  %s1822_s30 = smov %s2161_s23  }
 0x13d   : >> { %s921_s11 = scalar_lea.vmem %s902_s16, %s1295_s6 [#allocation7]   ;;  %s922_s9 = scalar_lea.vmem %s904_s0, %s1295_s6  }
 0x140 PF: > { %s17_s22 = sadd.s32 1, %s1731_s22   ;;  %s2138_s18 = smov %s1719_s19 }
 0x141   : > { %p14_p9 = scmp.ge.s32.totalorder %s17_s22, 4   ;;  %s2139_s19 = smov %s1907_s29 }
 0x142   : > { %s2140_s20 = smov %s1727_s21  ;;  %s2141_s21 = smov %s2143_s24 }
 0x143   :  { %16 = sbr.rel (!%p14_p9) target bundleno = 5 (0x5), region = 346 }
 0x148   :  { %952 = vsyncpa [#allocation4], 1 }
 0x149   :  { %954 = vsyncpa [#allocation4 + $0x1], 1 }

// kernel: tpu_custom_call.1
= control target key start
LH: loop header
LB: loop body
LE: loop exit
PB: predicated region body
PF: predicated region fallthrough
CT: control target
= control target key end

     0   :  { %s2119_s0 = inlined_call_operand.vmem [shape: bf16[48,32], index: 0, kind: input, shape index: {}]   ;;  %s2120_s1 = inlined_call_operand.hbm [shape: bf16[32,384], index: 1, kind: input, shape index: {}]   ;;  %s2121_s2 = inlined_call_operand.vmem [shape: f32[1,384], index: 2, kind: input, shape index: {}]   ;;  %s2122_s3 = inlined_call_operand.vmem [shape: f32[48,32], index: 3, kind: output, shape index: {0}]   ;;  %s2123_s4 = inlined_call_operand.vmem [shape: f32[48,8], index: 4, kind: output, shape index: {1}]   ;;  %s2124_s5 = inlined_call_operand.vmem [shape: f32[48,28], index: 5, kind: output, shape index: {2}]  }
   0x1   :  { %2125 = sst [smem:[#allocation9_spill]] %s2119_s0 }
   0x2   :  { %11 = vsyncpa [#allocation4], 0  ;;  %s1862_s18 = smov 0   ;;  %s1864_s19 = smov 0  }
   0x3   :  { %s1866_s20 = smov 0   ;;  %s1868_s21 = smov 0  }
   0x4   :  { %s1870_s22 = smov 0  }
   0x5 LB: > { %s1202_s23 = sadd.s32 4294967295, %s1731_s22   ;;  %s29_s24 = sadd.s32 1, %s1727_s21  ;;  %s1731_s22 = sphi %s1870_s22, %s17_s22   ;;  %s1727_s21 = sphi %s1868_s21, %s2141_s21   ;;  %s1723_s20 = sphi %s1866_s20, %s2140_s20   ;;  %s1719_s19 = sphi %s1864_s19, %s2139_s19   ;;  %s1715_s18 = sphi %s1862_s18, %s2138_s18  }
   0x6   : > { %p31_p0 = scmp.ge.s32.totalorder %s29_s24, 2  ;;  %s111_s25 = sadd.s32 1, %s1719_s19 }
   0x7   : > { %p121_p1 = scmp.ne.s32.totalorder %s1719_s19, %s1715_s18  ;;  %p122_p2 = scmp.eq.s32.totalorder %s1202_s23, 1 }
   0x8   : > { %s2143_s24 = smov (%p31_p0, %s29_s24), 0  ;;  %p1204_p4 = scmp.ge.s32.totalorder %s1731_s22, 1 }
   0x9   : > { %p1894_p3 = por %p122_p2, %p121_p1  ;;  %s108_s27 = ssub.s32 %s1727_s21, %s2143_s24 }
   0xa   : > { %p187_p5 = scmp.lt.s32.totalorder %s1731_s22, 3  ;;  %p109_p6 = scmp.eq.s32.totalorder %s108_s27, 0 }
   0xb   : > { %p1902_p8 = scmp.eq.s32.totalorder %s1202_s23, 0  ;;  %s202_s7 = sshll.u32 %s2120_s1, 4  ;;  %s203_s7 = int_to_ptr.hbm [resolvable:$true] %s202_s7 }
   0xc   : > { %p188_p7 = pnand %p1204_p4, %p187_p5  ;;  %s1829_s8 = smov [#allocation3]  }
   0xd   : > { %s1907_s29 = scalar_select %p109_p6, %s1719_s19, %s111_s25  }
   0xe   : > { %p1322_p9 = pneg %p188_p7  ;;  %s204_s9 = sshll.u32 %s1829_s8, 4  ;;  %s205_s9 = int_to_ptr.vmem [resolvable:$true] %s204_s9 }
   0xf   : > { %s1830_s10 = smov 192   ;;  %s1831_s11 = smov 12  }
  0x10   : > { %p1323_p10 = pnand %p1902_p8, %p1322_p9  ;;  %243 = sbr.rel (%p188_p7) target bundleno = 320 (0x140), region = 32 }
  0x12   : > { %1325 = dma.hbm_to_vmem [thread:$0]  (!%p1323_p10), %s203_s7, 768, %s205_s9, [#allocation4], %s1830_s10, %s1830_s10, %s1831_s11  }
  0x15   : > { %1710 = dma.done.wait (%p1902_p8), [#allocation4], 768  }
  0x16   : > { %1712 = vsyncadd (%p1902_p8), [#allocation4], 4294966528  ;;  %s1919_s12 = sshll.u32 %s1723_s20, 2  ;;  %v1304_v0 = vld [vmem:[#allocation3 + $0x1c] sm:$0xf]  ;;  %s2128_s0 = sld [smem:[#allocation9_spill]] }
  0x17   : > { %p291_p11 = scmp.lt.s32.totalorder %s1919_s12, 5  ;;  %v1238_v1 = vld [vmem:[#allocation3 + $0x24] sm:$0xf0]  ;;  %v1244_v2 = vld [vmem:[#allocation3 + $0x20] sm:$0xf]  ;;  %vm402_vm0 = vcmask 261120  }
  0x18   : > { %v1241_v3 = vor.u32 %v1304_v0, %v1238_v1  ;;  %v1306_v4 = vld [vmem:[#allocation3 + $0x28] sm:$0xf0]  ;;  %v1301_v5 = vld [vmem:[#allocation3 + $0x4] sm:$0xf]  ;;  %v1226_v6 = vld [vmem:[#allocation3 + $0xc] sm:$0xf0] }
  0x19   : > { %s292_s13 = scalar_select %p291_p11, %s1919_s12, 5  ;;  %v1245_v7 = vor.u32 %v1306_v4, %v1244_v2  ;;  %v1232_v8 = vld [vmem:[#allocation3 + $0x8] sm:$0xf]  ;;  %v1303_v9 = vld [vmem:[#allocation3 + $0x10] sm:$0xf0]  ;;  %v1229_v10 = vor.u32 %v1301_v5, %v1226_v6  ;;  %vm529_vm1 = vcmask 64512  }
  0x1a   : > { %434 = vmatpush.bf16.msra.mxu1 %v1241_v3  ;;  %v1236_v11 = vld [vmem:[#allocation3 + $0x18] sm:$0xf]  ;;  %v1305_v12 = vld [vmem:[#allocation3 + $0x20] sm:$0xf0]  ;;  %v1224_v13 = vld [vmem:[#allocation3] sm:$0xf]  ;;  %v1233_v14 = vor.u32 %v1303_v9, %v1232_v8 }
  0x1b   : > { %s1213_s14 = sshll.u32 %s292_s13, 2  ;;  %453 = vmatpush.bf16.msra.mxu2 %v1245_v7  ;;  %v1237_v15 = vor.u32 %v1305_v12, %v1236_v11  ;;  %v1302_v16 = vld [vmem:[#allocation3 + $0x8] sm:$0xf0]  ;;  %s271_s23 = sand.u32 1, %s1715_s18   ;;  %v505_v20 = vld [vmem:[%s2121_s2] sm:$0x7] }
  0x1c   : > { %s297_s17 = scalar_lea.vmem %s2128_s0, %s1213_s14  ;;  %v1225_v18 = vor.u32 %v1302_v16, %v1224_v13  ;;  %s1209_s28 = sshll.u32 %s271_s23, 5  ;;  %v508_v21 = vperm.slane %v505_v20, 1  ;;  %v507_v24 = vperm.slane %v505_v20, 0  ;;  %v509_v25 = vperm.slane %v505_v20, 2 }
  0x1d   : > { %v1299_v17 = vld [vmem:[%s297_s17] sm:$0xff]  ;;  %1316 = vmatpush.bf16.msra.mxu3 %v1237_v15  ;;  %415 = vmatpush.bf16.msra.mxu0 %v1237_v15  ;;  %v1300_v19 = vld [vmem:[%s297_s17 + $0x8] sm:$0xff]  ;;  %s1936_s30 = scalar_lea.vmem [#allocation6], %s1209_s28   ;;  %vm534_vm2 = vcmask 228352   ;;  %s1940_s18 = scalar_lea.vmem [#allocation5], %s1209_s28  }
  0x1e   : > { %435 = vmatpush.bf16.msra.mxu1 %v1229_v10  ;;  %s1944_s6 = scalar_lea.vmem [#allocation7], %s1209_s28   ;;  %s555_s7 = ssub.s32 (%p1894_p3), 6, %s1919_s12 }
  0x1f   : > { %454 = vmatpush.bf16.msra.mxu2 %v1233_v14  ;;  %s1307_s8 = sshll.u32 (%p1894_p3), %s1723_s20, 5  ;;  %p556_p12 = scmp.lt.s32.totalorder (%p1894_p3), %s555_s7, 4 }
  0x20   : > { %s1973_s11 = scalar_lea.vmem (%p1894_p3), %s2122_s3, %s1307_s8  }
  0x21   : > { %1248 = vmatmul.msk.bf16.vlgmr.msra.gmra.mxu1 %vm402_vm0, %v1299_v17  ;;  %1317 = vmatpush.bf16.msra.mxu3 %v1225_v18 }
  0x22   : > { %1250 = vmatmul.msk.bf16.vlgmr.msra.gmra.mxu2 %vm402_vm0, %v1299_v17  ;;  %416 = vmatpush.bf16.msra.mxu0 %v1225_v18 }
  0x24   : > { %1247 = vmatmul.msk.bf16.vlgmr.msra.gmra.mxu3 %vm402_vm0, %v1300_v19 }
  0x25   : > { %1246 = vmatmul.msk.bf16.vlgmr.msra.gmra.mxu0 %vm402_vm0, %v1299_v17 }
  0x31   : > { %1249 = vmatmul.msk.bf16.gmra.mxu1 %vm402_vm0, %v1300_v19 }
  0x32   : > { %1251 = vmatmul.msk.bf16.gmra.mxu2 %vm402_vm0, %v1300_v19 }
  0x9e   : > { %v437_v22 = vpop.f32.mrf.mxu1 }
  0x9f   : > { %v514_v23 = vadd.f32 %v508_v21, %v437_v22 }
  0xa1   : > { %530 = vst.msk [vmem:[%s1936_s30] sm:$0xff] %vm529_vm1, %v514_v23 }
  0xa2   : > { %v418_v26 = vpop.f32.mrf.mxu0 }
  0xa3   : > { %v513_v27 = vadd.f32 %v507_v24, %v418_v26 }
  0xa5   : > { %v456_v28 = vpop.f32.mrf.mxu2  ;;  %525 = vst.msk [vmem:[%s1940_s18] sm:$0xff] %vm402_vm0, %v513_v27 }
  0xa6   : > { %v515_v29 = vadd.f32 %v509_v25, %v456_v28  ;;  %v439_v30 = vpop.f32.mrf.mxu1 }
  0xa7   : > { %v517_v31 = vadd.f32 %v508_v21, %v439_v30  ;;  %v423_v32 = vpop.f32.mrf.mxu3 }
  0xa8   : > { %535 = vst.msk [vmem:[%s1944_s6] sm:$0xff] %vm534_vm2, %v515_v29  ;;  %v519_v33 = vadd.f32 %v507_v24, %v423_v32 }
  0xa9   : > { %531 = vst.msk [vmem:[%s1936_s30 + $0x8] sm:$0xff] %vm529_vm1, %v517_v31 }
  0xaa   : > { %527 = vst.msk [vmem:[%s1940_s18 + $0x10] sm:$0xff] %vm402_vm0, %v519_v33  ;;  %v420_v34 = vpop.f32.mrf.mxu0 }
  0xab   : > { %v516_v35 = vadd.f32 %v507_v24, %v420_v34 }
  0xad   : > { %v458_v36 = vpop.f32.mrf.mxu2  ;;  %526 = vst.msk [vmem:[%s1940_s18 + $0x8] sm:$0xff] %vm402_vm0, %v516_v35 }
  0xae   : > { %v518_v37 = vadd.f32 %v509_v25, %v458_v36  ;;  %v442_v38 = vpop.f32.mrf.mxu1 }
  0xaf   : > { %v520_v39 = vadd.f32 %v508_v21, %v442_v38  ;;  %v425_v40 = vpop.f32.mrf.mxu3 }
  0xb0   : > { %536 = vst.msk [vmem:[%s1944_s6 + $0x8] sm:$0xff] %vm534_vm2, %v518_v37  ;;  %v522_v41 = vadd.f32 %v507_v24, %v425_v40 }
  0xb1   : > { %532 = vst.msk [vmem:[%s1936_s30 + $0x10] sm:$0xff] %vm529_vm1, %v520_v39 }
  0xb2   : > { %528 = vst.msk [vmem:[%s1940_s18 + $0x18] sm:$0xff] %vm402_vm0, %v522_v41 }
  0xb5   : > { %v461_v42 = vpop.f32.mrf.mxu2 }
  0xb6   : > { %v521_v43 = vadd.f32 %v509_v25, %v461_v42  ;;  %v444_v44 = vpop.f32.mrf.mxu1 }
  0xb7   : > { %v523_v45 = vadd.f32 %v508_v21, %v444_v44 }
  0xb8   : > { %537 = vst.msk [vmem:[%s1944_s6 + $0x10] sm:$0xff] %vm534_vm2, %v521_v43 }
  0xb9   : > { %533 = vst.msk [vmem:[%s1936_s30 + $0x18] sm:$0xff] %vm529_vm1, %v523_v45 }
  0xbc   : > { %553 = sbr.rel (!%p1894_p3) target bundleno = 232 (0xe8), region = 48 }
  0xbd   : > { %v463_v46 = vpop.f32.mrf.mxu2 }
  0xbe   : > { %v524_v47 = vadd.f32 %v509_v25, %v463_v46 }
  0xc0   : > { %538 = vst.msk [vmem:[%s1944_s6 + $0x18] sm:$0xff] %vm534_vm2, %v524_v47 }
  0xc1   : > { %s2145_s7 = smov (!%p556_p12, %s555_s7), 4 }
  0xc2   : > { %s1256_s13 = sshll.u32 %s2145_s7, 3 }
  0xc3   : > { %p1259_p13 = scmp.eq.s32.totalorder %s1256_s13, 0 }
  0xc4   : > { %s1979_s14 = sshrl.u32 (!%p1259_p13), %s2145_s7, 2 }
  0xc5   : > { %564 = sbr.rel (%p1259_p13) target bundleno = 232 (0xe8), region = 52  ;;  %p1260_p0 = scmp.le.s32.totalorder (!%p1259_p13), %s1979_s14, 0 }
  0xca   : > { %1067 = sbr.rel (%p1260_p0) target bundleno = 215 (0xd7), region = 274  ;;  %s2129_s15 = smov (!%p1260_p0), %s1973_s11 }
  0xcb   : > { %s2130_s16 = smov (!%p1260_p0), %s1940_s18  ;;  %s1988_s17 = smov (!%p1260_p0), 0  }
  0xcc   : > { %s1745_s23 = smov (!%p1260_p0), 0  }
  0xcf LB: >> { %v633_v48 = vld [vmem:[%s1739_s16] sm:$0xff]  ;;  %v635_v49 = vld [vmem:[%s1739_s16 + $0x8] sm:$0xff]  ;;  %v637_v50 = vld [vmem:[%s1739_s16 + $0x10] sm:$0xff]  ;;  %s641_s25 = sadd.s32 1, %s1743_s17  ;;  %s627_s23 = sadd.s32 1, %s1747_s23   ;;  %s1747_s23 = sphi %s1745_s23, %s627_s23   ;;  %s1743_s17 = sphi %s1988_s17, %s2131_s17   ;;  %s1739_s16 = sphi %s2130_s16, %s646_s16   ;;  %s1735_s15 = sphi %s2129_s15, %s647_s15  }
  0xd0   : >> { %634 = vst [vmem:[%s1735_s15] sm:$0xff] %v633_v48  ;;  %v639_v51 = vld [vmem:[%s1739_s16 + $0x18] sm:$0xff]  ;;  %p642_p1 = scmp.ge.s32.totalorder %s641_s25, %s1979_s14  ;;  %p626_p2 = scmp.ge.s32.totalorder %s627_s23, %s1979_s14 }
  0xd1   : >> { %636 = vst [vmem:[%s1735_s15 + $0x8] sm:$0xff] %v635_v49 }
  0xd2   : >> { %638 = vst [vmem:[%s1735_s15 + $0x10] sm:$0xff] %v637_v50  ;;  %s2147_s25 = smov (%p642_p1, %s641_s25), 0  ;;  %629 = sbr.rel (!%p626_p2) target bundleno = 207 (0xcf), region = 280 }
  0xd3   : >> { %640 = vst [vmem:[%s1735_s15 + $0x18] sm:$0xff] %v639_v51  ;;  %s1261_s27 = sshll.u32 %s2147_s25, 5  ;;  %s2131_s17 = smov %s2147_s25 }
  0xd4   : >> { %s646_s16 = scalar_lea.vmem %s1940_s18, %s1261_s27 [#allocation5]   ;;  %s647_s15 = scalar_lea.vmem %s1973_s11, %s1261_s27  }
  0xd7 PF: > { %s2004_s28 = sand.u32 3, %s2145_s7   ;;  %s1308_s8 = sshll.u32 %s1979_s14, 5 }
  0xd8   : > { %s652_s9 = scalar_lea.vmem %s1940_s18, %s1308_s8 [#allocation5]   ;;  %s654_s10 = scalar_lea.vmem %s1973_s11, %s1308_s8  }
  0xd9   : > { %p1266_p4 = scmp.le.s32.totalorder %s2004_s28, 0 }
  0xda   : > { %s1749_s13 = smov (!%p1266_p4), %s654_s10   ;;  %s1753_s17 = smov (!%p1266_p4), %s652_s9  }
  0xdb   : > { %1081 = sbr.rel (%p1266_p4) target bundleno = 232 (0xe8), region = 285  ;;  %s1757_s27 = smov (!%p1266_p4), 0  }
  0xdc   : > { %s1761_s0 = smov (!%p1266_p4), 0  }
  0xe0 LB: >> { %v664_v52 = vld [vmem:[%s1755_s17] sm:$0xff]  ;;  %s666_s7 = sadd.s32 1, %s1759_s27  ;;  %s658_s0 = sadd.s32 1, %s1763_s0   ;;  %s1763_s0 = sphi %s1761_s0, %s658_s0   ;;  %s1759_s27 = sphi %s1757_s27, %s1758_s27   ;;  %s1755_s17 = sphi %s1753_s17, %s671_s17   ;;  %s1751_s13 = sphi %s1749_s13, %s672_s13  }
  0xe1   : >> { %665 = vst [vmem:[%s1751_s13] sm:$0xff] %v664_v52  ;;  %p667_p5 = scmp.ge.s32.totalorder %s666_s7, %s2004_s28  ;;  %p657_p6 = scmp.ge.s32.totalorder %s658_s0, %s2004_s28 }
  0xe3   : >> { %s2149_s7 = smov (%p667_p5, %s666_s7), 0  ;;  %660 = sbr.rel (!%p657_p6) target bundleno = 224 (0xe0), region = 291 }
  0xe4   : >> { %s1267_s18 = sshll.u32 %s2149_s7, 3  ;;  %s1758_s27 = smov %s2149_s7  }
  0xe5   : >> { %s671_s17 = scalar_lea.vmem %s652_s9, %s1267_s18 [#allocation5]   ;;  %s672_s13 = scalar_lea.vmem %s654_s10, %s1267_s18  }
  0xe8 PF: > { %678 = sbr.rel (!%p1894_p3) target bundleno = 276 (0x114), region = 100  ;;  %s680_s11 = ssub.s32 (%p1894_p3), 6, %s1919_s12 }
  0xe9   : > { %s1310_s14 = sshll.u32 (%p1894_p3), %s1723_s20, 5  ;;  %p681_p7 = scmp.lt.s32.totalorder (%p1894_p3), %s680_s11, 4 }
  0xea   : > { %s2019_s23 = scalar_lea.vmem (%p1894_p3), %s2123_s4, %s1310_s14  }
  0xed   : > { %s2151_s11 = smov (!%p681_p7, %s680_s11), 4 }
  0xee   : > { %s1270_s0 = sshll.u32 %s2151_s11, 3 }
  0xef   : > { %p1273_p8 = scmp.eq.s32.totalorder %s1270_s0, 0 }
  0xf0   : > { %s2025_s25 = sshrl.u32 (!%p1273_p8), %s2151_s11, 2 }
  0xf1   : > { %689 = sbr.rel (%p1273_p8) target bundleno = 276 (0x114), region = 104  ;;  %p1274_p9 = scmp.le.s32.totalorder (!%p1273_p8), %s2025_s25, 0 }
  0xf6   : > { %1095 = sbr.rel (%p1274_p9) target bundleno = 259 (0x103), region = 296  ;;  %s2132_s28 = smov (!%p1274_p9), %s2019_s23 }
  0xf7   : > { %s2133_s8 = smov (!%p1274_p9), %s1936_s30  ;;  %s2034_s9 = smov (!%p1274_p9), 0  }
  0xf8   : > { %s1777_s10 = smov (!%p1274_p9), 0  }
  0xfb LB: >> { %v758_v53 = vld [vmem:[%s1771_s8] sm:$0xff]  ;;  %v760_v54 = vld [vmem:[%s1771_s8 + $0x8] sm:$0xff]  ;;  %v762_v55 = vld [vmem:[%s1771_s8 + $0x10] sm:$0xff]  ;;  %s766_s13 = sadd.s32 1, %s1775_s9  ;;  %s752_s10 = sadd.s32 1, %s1779_s10   ;;  %s1779_s10 = sphi %s1777_s10, %s752_s10   ;;  %s1775_s9 = sphi %s2034_s9, %s2134_s9   ;;  %s1771_s8 = sphi %s2133_s8, %s771_s8   ;;  %s1767_s28 = sphi %s2132_s28, %s772_s28  }
  0xfc   : >> { %759 = vst [vmem:[%s1767_s28] sm:$0xff] %v758_v53  ;;  %v764_v56 = vld [vmem:[%s1771_s8 + $0x18] sm:$0xff]  ;;  %p767_p10 = scmp.ge.s32.totalorder %s766_s13, %s2025_s25  ;;  %p751_p11 = scmp.ge.s32.totalorder %s752_s10, %s2025_s25 }
  0xfd   : >> { %761 = vst [vmem:[%s1767_s28 + $0x8] sm:$0xff] %v760_v54 }
  0xfe   : >> { %763 = vst [vmem:[%s1767_s28 + $0x10] sm:$0xff] %v762_v55  ;;  %s2153_s13 = smov (%p767_p10, %s766_s13), 0  ;;  %754 = sbr.rel (!%p751_p11) target bundleno = 251 (0xfb), region = 302 }
  0xff   : >> { %765 = vst [vmem:[%s1767_s28 + $0x18] sm:$0xff] %v764_v56  ;;  %s1275_s17 = sshll.u32 %s2153_s13, 5  ;;  %s2134_s9 = smov %s2153_s13 }
 0x100   : >> { %s771_s8 = scalar_lea.vmem %s1936_s30, %s1275_s17 [#allocation6]   ;;  %s772_s28 = scalar_lea.vmem %s2019_s23, %s1275_s17  }
 0x103 PF: > { %s2050_s27 = sand.u32 3, %s2151_s11   ;;  %s1311_s7 = sshll.u32 %s2025_s25, 5 }
 0x104   : > { %s777_s18 = scalar_lea.vmem %s1936_s30, %s1311_s7 [#allocation6]   ;;  %s779_s14 = scalar_lea.vmem %s2019_s23, %s1311_s7  }
 0x105   : > { %p1280_p12 = scmp.le.s32.totalorder %s2050_s27, 0 }
 0x106   : > { %s1781_s15 = smov (!%p1280_p12), %s779_s14   ;;  %s1785_s16 = smov (!%p1280_p12), %s777_s18  }
 0x107   : > { %1109 = sbr.rel (%p1280_p12) target bundleno = 276 (0x114), region = 307  ;;  %s1789_s0 = smov (!%p1280_p12), 0  }
 0x108   : > { %s1793_s9 = smov (!%p1280_p12), 0  }
 0x10c LB: >> { %v789_v57 = vld [vmem:[%s1787_s16] sm:$0xff]  ;;  %s791_s11 = sadd.s32 1, %s1791_s0  ;;  %s783_s9 = sadd.s32 1, %s1795_s9   ;;  %s1795_s9 = sphi %s1793_s9, %s783_s9   ;;  %s1791_s0 = sphi %s1789_s0, %s1790_s0   ;;  %s1787_s16 = sphi %s1785_s16, %s796_s16   ;;  %s1783_s15 = sphi %s1781_s15, %s797_s15  }
 0x10d   : >> { %790 = vst [vmem:[%s1783_s15] sm:$0xff] %v789_v57  ;;  %p792_p13 = scmp.ge.s32.totalorder %s791_s11, %s2050_s27  ;;  %p782_p0 = scmp.ge.s32.totalorder %s783_s9, %s2050_s27 }
 0x10f   : >> { %s2155_s11 = smov (%p792_p13, %s791_s11), 0  ;;  %785 = sbr.rel (!%p782_p0) target bundleno = 268 (0x10c), region = 313 }
 0x110   : >> { %s1281_s30 = sshll.u32 %s2155_s11, 3  ;;  %s1790_s0 = smov %s2155_s11  }
 0x111   : >> { %s796_s16 = scalar_lea.vmem %s777_s18, %s1281_s30 [#allocation6]   ;;  %s797_s15 = scalar_lea.vmem %s779_s14, %s1281_s30  }
 0x114 PF: > { %803 = sbr.rel (!%p1894_p3) target bundleno = 320 (0x140), region = 152  ;;  %s805_s23 = ssub.s32 (%p1894_p3), 6, %s1919_s12 }
 0x115   : > { %s1313_s25 = sshll.u32 (%p1894_p3), %s1723_s20, 5  ;;  %p806_p1 = scmp.lt.s32.totalorder (%p1894_p3), %s805_s23, 4 }
 0x116   : > { %s2065_s10 = scalar_lea.vmem (%p1894_p3), %s2124_s5, %s1313_s25  }
 0x119   : > { %s2157_s23 = smov (!%p806_p1, %s805_s23), 4 }
 0x11a   : > { %s1284_s13 = sshll.u32 %s2157_s23, 3 }
 0x11b   : > { %p1287_p2 = scmp.eq.s32.totalorder %s1284_s13, 0 }
 0x11c   : > { %s2071_s17 = sshrl.u32 (!%p1287_p2), %s2157_s23, 2 }
 0x11d   : > { %814 = sbr.rel (%p1287_p2) target bundleno = 320 (0x140), region = 156  ;;  %p1288_p3 = scmp.le.s32.totalorder (!%p1287_p2), %s2071_s17, 0 }
 0x122   : > { %1123 = sbr.rel (%p1288_p3) target bundleno = 303 (0x12f), region = 318  ;;  %s2135_s20 = smov (!%p1288_p3), %s2065_s10 }
 0x123   : > { %s2136_s26 = smov (!%p1288_p3), %s1944_s6  ;;  %s2080_s12 = smov (!%p1288_p3), 0  }
 0x124   : > { %s1809_s27 = smov (!%p1288_p3), 0  }
 0x127 LB: >> { %v883_v58 = vld [vmem:[%s1803_s26] sm:$0xff]  ;;  %v885_v59 = vld [vmem:[%s1803_s26 + $0x8] sm:$0xff]  ;;  %v887_v60 = vld [vmem:[%s1803_s26 + $0x10] sm:$0xff]  ;;  %s891_s7 = sadd.s32 1, %s1807_s12  ;;  %s877_s27 = sadd.s32 1, %s1811_s27   ;;  %s1811_s27 = sphi %s1809_s27, %s877_s27   ;;  %s1807_s12 = sphi %s2080_s12, %s2137_s12   ;;  %s1803_s26 = sphi %s2136_s26, %s896_s26   ;;  %s1799_s20 = sphi %s2135_s20, %s897_s20  }
 0x128   : >> { %884 = vst [vmem:[%s1799_s20] sm:$0xff] %v883_v58  ;;  %v889_v61 = vld [vmem:[%s1803_s26 + $0x18] sm:$0xff]  ;;  %p892_p4 = scmp.ge.s32.totalorder %s891_s7, %s2071_s17  ;;  %p876_p5 = scmp.ge.s32.totalorder %s877_s27, %s2071_s17 }
 0x129   : >> { %886 = vst [vmem:[%s1799_s20 + $0x8] sm:$0xff] %v885_v59 }
 0x12a   : >> { %888 = vst [vmem:[%s1799_s20 + $0x10] sm:$0xff] %v887_v60  ;;  %s2159_s7 = smov (%p892_p4, %s891_s7), 0  ;;  %879 = sbr.rel (!%p876_p5) target bundleno = 295 (0x127), region = 324 }
 0x12b   : >> { %890 = vst [vmem:[%s1799_s20 + $0x18] sm:$0xff] %v889_v61  ;;  %s1289_s18 = sshll.u32 %s2159_s7, 5  ;;  %s2137_s12 = smov %s2159_s7 }
 0x12c   : >> { %s896_s26 = scalar_lea.vmem %s1944_s6, %s1289_s18 [#allocation7]   ;;  %s897_s20 = scalar_lea.vmem %s2065_s10, %s1289_s18  }
 0x12f PF: > { %s2096_s14 = sand.u32 3, %s2157_s23   ;;  %s1314_s15 = sshll.u32 %s2071_s17, 5 }
 0x130   : > { %s902_s16 = scalar_lea.vmem %s1944_s6, %s1314_s15 [#allocation7]   ;;  %s904_s0 = scalar_lea.vmem %s2065_s10, %s1314_s15  }
 0x131   : > { %p1294_p6 = scmp.le.s32.totalorder %s2096_s14, 0 }
 0x132   : > { %s1813_s9 = smov (!%p1294_p6), %s904_s0   ;;  %s1817_s11 = smov (!%p1294_p6), %s902_s16  }
 0x133   : > { %1137 = sbr.rel (%p1294_p6) target bundleno = 320 (0x140), region = 329  ;;  %s1821_s30 = smov (!%p1294_p6), 0  }
 0x134   : > { %s1825_s25 = smov (!%p1294_p6), 0  }
 0x138 LB: >> { %v914_v62 = vld [vmem:[%s1819_s11] sm:$0xff]  ;;  %s916_s23 = sadd.s32 1, %s1823_s30  ;;  %s908_s25 = sadd.s32 1, %s1827_s25   ;;  %s1827_s25 = sphi %s1825_s25, %s908_s25   ;;  %s1823_s30 = sphi %s1821_s30, %s1822_s30   ;;  %s1819_s11 = sphi %s1817_s11, %s921_s11   ;;  %s1815_s9 = sphi %s1813_s9, %s922_s9  }
 0x139   : >> { %915 = vst [vmem:[%s1815_s9] sm:$0xff] %v914_v62  ;;  %p917_p7 = scmp.ge.s32.totalorder %s916_s23, %s2096_s14  ;;  %p907_p8 = scmp.ge.s32.totalorder %s908_s25, %s2096_s14 }
 0x13b   : >> { %s2161_s23 = smov (%p917_p7, %s916_s23), 0  ;;  %910 = sbr.rel (!%p907_p8) target bundleno = 312 (0x138), region = 335 }
 0x13c   : >> { %s1295_s6 = sshll.u32 %s2161_s23, 3  ;;  %s1822_s30 = smov %s2161_s23  }
 0x13d   : >> { %s921_s11 = scalar_lea.vmem %s902_s16, %s1295_s6 [#allocation7]   ;;  %s922_s9 = scalar_lea.vmem %s904_s0, %s1295_s6  }
 0x140 PF: > { %s17_s22 = sadd.s32 1, %s1731_s22   ;;  %s2138_s18 = smov %s1719_s19 }
 0x141   : > { %p14_p9 = scmp.ge.s32.totalorder %s17_s22, 4   ;;  %s2139_s19 = smov %s1907_s29 }
 0x142   : > { %s2140_s20 = smov %s1727_s21  ;;  %s2141_s21 = smov %s2143_s24 }
 0x143   :  { %16 = sbr.rel (!%p14_p9) target bundleno = 5 (0x5), region = 346 }
 0x148   :  { %952 = vsyncpa [#allocation4], 1 }
 0x149   :  { %954 = vsyncpa [#allocation4 + $0x1], 1 }

</bundles_post_ra>
